<compile_context>
chip_gen: v5e
topology: v5e:2x2
jax: 0.10.0
libtpu: 0.0.40
codegen_flags: <defaults>
</compile_context>

<pallas_src>
import jax
import jax.numpy as jnp
from jax.experimental import pallas as pl
from jax.experimental.pallas import tpu as pltpu

EPS = 1e-5


def _vmem_spec():
    return pl.BlockSpec(memory_space=pltpu.MemorySpace.VMEM)


# ---------------------------------------------------------------------------
# Fused kernel: backbone (pool folded into matmul) -> projector -> head
# ---------------------------------------------------------------------------
def fused_forward_kernel(x_ref, wbb_ref, bbb_ref,
                         wproj_ref, bproj_ref,
                         w1_ref, b1_ref, g_ref, be_ref,
                         w2_ref, b2_ref, o_ref):
    # TODO(synk): simsiam.backbone is an external module; frozen stand-in:
    # global average pool (folded into wbb_ref = repeat(W, H*W)/H*W) + Linear
    # + ReLU.
    feat = jnp.dot(x_ref[...], wbb_ref[...],
                   preferred_element_type=jnp.float32) + bbb_ref[...]
    feat = jnp.maximum(feat, 0.0)                                   # (B, feat)

    # TODO(synk): simsiam.projector is an external module; stand-in = Linear.
    proj = jnp.dot(feat, wproj_ref[...],
                   preferred_element_type=jnp.float32) + bproj_ref[...]  # (B, proj_out)

    # Head: nn.Linear(proj_out, hidden)
    h = jnp.dot(proj, w1_ref[...],
                preferred_element_type=jnp.float32) + b1_ref[...]   # (B, hidden)

    # nn.BatchNorm1d(hidden): training mode -> whole-batch stats, biased var.
    mean = jnp.mean(h, axis=0, keepdims=True)
    var = jnp.mean((h - mean) ** 2, axis=0, keepdims=True)
    hn = (h - mean) * jax.lax.rsqrt(var + EPS) * g_ref[...] + be_ref[...]

    # nn.ReLU()
    r = jnp.maximum(hn, 0.0)

    # nn.Linear(hidden, n_classes) -- w2/b2 zero-padded to lane-dense width.
    o_ref[...] = jnp.dot(r, w2_ref[...],
                         preferred_element_type=jnp.float32) + b2_ref[...]


# ---------------------------------------------------------------------------
# Wrapper
# ---------------------------------------------------------------------------
def downstream_classifier_forward(x, params):
    B, C, H, W = x.shape
    HW = H * W

    # Flatten NCHW -> (B, C*H*W); channel-major / spatial-minor matches the
    # effective-weight construction below.
    x2d = x.reshape(B, C * HW)

    # Fold the global average pool into the (frozen) backbone weight:
    # W_eff[c*HW + s, f] = w_bb[c, f] / HW   ->   x2d @ W_eff == mean-pool @ w_bb.
    w_eff = jnp.repeat(params["w_bb"], HW, axis=0) / float(HW)      # (C*HW, feat)

    # Pad the classifier to a lane-dense output width (multiple of 128).
    n_classes = params["w2"].shape[1]
    n_pad = pl.cdiv(n_classes, 128) * 128
    w2p = jnp.pad(params["w2"], ((0, 0), (0, n_pad - n_classes)))
    b2p = jnp.pad(params["b2"], ((0, 0), (0, n_pad - n_classes)))

    logits_pad = pl.pallas_call(
        fused_forward_kernel,
        out_shape=jax.ShapeDtypeStruct((B, n_pad), jnp.float32),
        in_specs=[_vmem_spec()] * 11,
        out_specs=_vmem_spec(),
    )(x2d, w_eff, params["b_bb"],
      params["w_proj"], params["b_proj"],
      params["w1"], params["b1"], params["gamma"], params["beta"],
      w2p, b2p)

    return logits_pad[:, :n_classes]


# ---------------------------------------------------------------------------
# Reference (pure JAX) for a correctness check -- literal module semantics
# ---------------------------------------------------------------------------
def reference_forward(x, p):
    B, C, H, W = x.shape
    pooled = jnp.mean(x.reshape(B, C, H * W), axis=-1)
    feat = jnp.maximum(pooled @ p["w_bb"] + p["b_bb"], 0.0)
    proj = feat @ p["w_proj"] + p["b_proj"]
    h = proj @ p["w1"] + p["b1"]
    mean = jnp.mean(h, axis=0, keepdims=True)
    var = jnp.mean((h - mean) ** 2, axis=0, keepdims=True)
    hn = (h - mean) * jax.lax.rsqrt(var + EPS) * p["gamma"] + p["beta"]
    r = jnp.maximum(hn, 0.0)
    return r @ p["w2"] + p["b2"]


# ---------------------------------------------------------------------------
if __name__ == "__main__":
    # Small shapes consistent with the module (proj_out/hidden passed small).
    B, C, H, W = 8, 4, 16, 16
    feat_dim, proj_out, hidden, n_classes = 128, 256, 128, 10

    key = jax.random.PRNGKey(0)
    ks = jax.random.split(key, 8)

    def init(k, shape, scale):
        return (scale * jax.random.normal(k, shape)).astype(jnp.float32)

    params = {
        # frozen backbone / projector stand-ins
        "w_bb":   init(ks[0], (C, feat_dim), 0.5),
        "b_bb":   init(ks[1], (1, feat_dim), 0.1),
        "w_proj": init(ks[2], (feat_dim, proj_out), 0.05),
        "b_proj": init(ks[3], (1, proj_out), 0.1),
        # trainable head: Linear -> BN1d -> ReLU -> Linear
        "w1":     init(ks[4], (proj_out, hidden), 0.05),
        "b1":     init(ks[5], (1, hidden), 0.1),
        "gamma":  jnp.ones((1, hidden), jnp.float32),   # BN default init
        "beta":   jnp.zeros((1, hidden), jnp.float32),  # BN default init
        "w2":     init(ks[6], (hidden, n_classes), 0.1),
        "b2":     init(ks[7], (1, n_classes), 0.1),
    }

    x = jax.random.normal(jax.random.PRNGKey(42), (B, C, H, W), jnp.float32)

    logits = downstream_classifier_forward(x, params)
    logits = jax.block_until_ready(logits)

    ref = reference_forward(x, params)
    assert logits.shape == (B, n_classes), logits.shape
    assert jnp.allclose(logits, ref, atol=1e-4, rtol=1e-4), "mismatch vs reference"

    print("KERNEL_OK")
</pallas_src>

<mosaic_0001>
module attributes {stable_mosaic.version = 11 : i64} {
  func.func @fused_forward_kernel(%arg0: memref<8x1024xf32, #tpu.memory_space<vmem>>, %arg1: memref<1024x128xf32, #tpu.memory_space<vmem>>, %arg2: memref<1x128xf32, #tpu.memory_space<vmem>>, %arg3: memref<128x256xf32, #tpu.memory_space<vmem>>, %arg4: memref<1x256xf32, #tpu.memory_space<vmem>>, %arg5: memref<256x128xf32, #tpu.memory_space<vmem>>, %arg6: memref<1x128xf32, #tpu.memory_space<vmem>>, %arg7: memref<1x128xf32, #tpu.memory_space<vmem>>, %arg8: memref<1x128xf32, #tpu.memory_space<vmem>>, %arg9: memref<128x128xf32, #tpu.memory_space<vmem>>, %arg10: memref<1x128xf32, #tpu.memory_space<vmem>>, %arg11: memref<8x128xf32, #tpu.memory_space<vmem>>) attributes {dimension_semantics = [], scalar_prefetch = 0 : i64, scratch_operands = 0 : i64, tpu.core_type = #tpu.core_type<tc>} {
    %c0 = arith.constant 0 : index
    %c0_0 = arith.constant 0 : index
    %0 = vector.load %arg0[%c0, %c0_0] : memref<8x1024xf32, #tpu.memory_space<vmem>>, vector<8x1024xf32>
    %c0_1 = arith.constant 0 : index
    %c0_2 = arith.constant 0 : index
    %1 = vector.load %arg1[%c0_1, %c0_2] : memref<1024x128xf32, #tpu.memory_space<vmem>>, vector<1024x128xf32>
    %cst = arith.constant dense<0.000000e+00> : vector<8x128xf32>
    %2 = tpu.matmul %0, %1, %cst {dimension_numbers = #tpu.dot_dimension_numbers<[1], [0], [0], [1], [0, 0, 1, 1], [], []>} : vector<8x1024xf32>, vector<1024x128xf32>, vector<8x128xf32> -> vector<8x128xf32>
    %c0_3 = arith.constant 0 : index
    %c0_4 = arith.constant 0 : index
    %3 = vector.load %arg2[%c0_3, %c0_4] : memref<1x128xf32, #tpu.memory_space<vmem>>, vector<1x128xf32>
    %4 = vector.broadcast %3 : vector<1x128xf32> to vector<8x128xf32>
    %5 = arith.addf %2, %4 : vector<8x128xf32>
    %cst_5 = arith.constant 0.000000e+00 : f32
    %6 = vector.broadcast %cst_5 : f32 to vector<8x128xf32>
    %7 = arith.maximumf %5, %6 : vector<8x128xf32>
    %c0_6 = arith.constant 0 : index
    %c0_7 = arith.constant 0 : index
    %8 = vector.load %arg3[%c0_6, %c0_7] : memref<128x256xf32, #tpu.memory_space<vmem>>, vector<128x256xf32>
    %cst_8 = arith.constant dense<0.000000e+00> : vector<8x256xf32>
    %9 = tpu.matmul %7, %8, %cst_8 {dimension_numbers = #tpu.dot_dimension_numbers<[1], [0], [0], [1], [0, 0, 1, 1], [], []>} : vector<8x128xf32>, vector<128x256xf32>, vector<8x256xf32> -> vector<8x256xf32>
    %c0_9 = arith.constant 0 : index
    %c0_10 = arith.constant 0 : index
    %10 = vector.load %arg4[%c0_9, %c0_10] : memref<1x256xf32, #tpu.memory_space<vmem>>, vector<1x256xf32>
    %11 = vector.broadcast %10 : vector<1x256xf32> to vector<8x256xf32>
    %12 = arith.addf %9, %11 : vector<8x256xf32>
    %c0_11 = arith.constant 0 : index
    %c0_12 = arith.constant 0 : index
    %13 = vector.load %arg5[%c0_11, %c0_12] : memref<256x128xf32, #tpu.memory_space<vmem>>, vector<256x128xf32>
    %cst_13 = arith.constant dense<0.000000e+00> : vector<8x128xf32>
    %14 = tpu.matmul %12, %13, %cst_13 {dimension_numbers = #tpu.dot_dimension_numbers<[1], [0], [0], [1], [0, 0, 1, 1], [], []>} : vector<8x256xf32>, vector<256x128xf32>, vector<8x128xf32> -> vector<8x128xf32>
    %c0_14 = arith.constant 0 : index
    %c0_15 = arith.constant 0 : index
    %15 = vector.load %arg6[%c0_14, %c0_15] : memref<1x128xf32, #tpu.memory_space<vmem>>, vector<1x128xf32>
    %16 = vector.broadcast %15 : vector<1x128xf32> to vector<8x128xf32>
    %17 = arith.addf %14, %16 : vector<8x128xf32>
    %cst_16 = arith.constant dense<0.000000e+00> : vector<128xf32>
    %18 = vector.multi_reduction <add>, %17, %cst_16 [0] : vector<8x128xf32> to vector<128xf32>
    %19 = vector.shape_cast %18 : vector<128xf32> to vector<1x128xf32>
    %cst_17 = arith.constant 8.000000e+00 : f32
    %20 = vector.broadcast %cst_17 : f32 to vector<1x128xf32>
    %21 = arith.divf %19, %20 : vector<1x128xf32>
    %22 = vector.broadcast %21 : vector<1x128xf32> to vector<8x128xf32>
    %23 = arith.subf %17, %22 : vector<8x128xf32>
    %24 = arith.mulf %23, %23 : vector<8x128xf32>
    %cst_18 = arith.constant dense<0.000000e+00> : vector<128xf32>
    %25 = vector.multi_reduction <add>, %24, %cst_18 [0] : vector<8x128xf32> to vector<128xf32>
    %26 = vector.shape_cast %25 : vector<128xf32> to vector<1x128xf32>
    %cst_19 = arith.constant 8.000000e+00 : f32
    %27 = vector.broadcast %cst_19 : f32 to vector<1x128xf32>
    %28 = arith.divf %26, %27 : vector<1x128xf32>
    %29 = vector.broadcast %21 : vector<1x128xf32> to vector<8x128xf32>
    %30 = arith.subf %17, %29 : vector<8x128xf32>
    %cst_20 = arith.constant 9.99999974E-6 : f32
    %31 = vector.broadcast %cst_20 : f32 to vector<1x128xf32>
    %32 = arith.addf %28, %31 : vector<1x128xf32>
    %33 = math.rsqrt %32 : vector<1x128xf32>
    %34 = vector.broadcast %33 : vector<1x128xf32> to vector<8x128xf32>
    %35 = arith.mulf %30, %34 : vector<8x128xf32>
    %c0_21 = arith.constant 0 : index
    %c0_22 = arith.constant 0 : index
    %36 = vector.load %arg7[%c0_21, %c0_22] : memref<1x128xf32, #tpu.memory_space<vmem>>, vector<1x128xf32>
    %37 = vector.broadcast %36 : vector<1x128xf32> to vector<8x128xf32>
    %38 = arith.mulf %35, %37 : vector<8x128xf32>
    %c0_23 = arith.constant 0 : index
    %c0_24 = arith.constant 0 : index
    %39 = vector.load %arg8[%c0_23, %c0_24] : memref<1x128xf32, #tpu.memory_space<vmem>>, vector<1x128xf32>
    %40 = vector.broadcast %39 : vector<1x128xf32> to vector<8x128xf32>
    %41 = arith.addf %38, %40 : vector<8x128xf32>
    %cst_25 = arith.constant 0.000000e+00 : f32
    %42 = vector.broadcast %cst_25 : f32 to vector<8x128xf32>
    %43 = arith.maximumf %41, %42 : vector<8x128xf32>
    %c0_26 = arith.constant 0 : index
    %c0_27 = arith.constant 0 : index
    %44 = vector.load %arg9[%c0_26, %c0_27] : memref<128x128xf32, #tpu.memory_space<vmem>>, vector<128x128xf32>
    %cst_28 = arith.constant dense<0.000000e+00> : vector<8x128xf32>
    %45 = tpu.matmul %43, %44, %cst_28 {dimension_numbers = #tpu.dot_dimension_numbers<[1], [0], [0], [1], [0, 0, 1, 1], [], []>} : vector<8x128xf32>, vector<128x128xf32>, vector<8x128xf32> -> vector<8x128xf32>
    %c0_29 = arith.constant 0 : index
    %c0_30 = arith.constant 0 : index
    %46 = vector.load %arg10[%c0_29, %c0_30] : memref<1x128xf32, #tpu.memory_space<vmem>>, vector<1x128xf32>
    %47 = vector.broadcast %46 : vector<1x128xf32> to vector<8x128xf32>
    %48 = arith.addf %45, %47 : vector<8x128xf32>
    %c0_31 = arith.constant 0 : index
    %c0_32 = arith.constant 0 : index
    %49 = vector.load %arg11[%c0_31, %c0_32] : memref<8x128xf32, #tpu.memory_space<vmem>>, vector<8x128xf32>
    tpu.vector_store %arg11[%c0_31, %c0_32], %48 {strides = array<i32>} : memref<8x128xf32, #tpu.memory_space<vmem>>, vector<8x128xf32>,
    return
  }
}

</mosaic_0001>

<bundles_post_ra>
// kernel: tpu_custom_call.1
= control target key start
LH: loop header
LB: loop body
LE: loop exit
PB: predicated region body
PF: predicated region fallthrough
CT: control target
= control target key end

     0   :  { %16 = vsyncpa [#allocation3], 0  ;;  %s964_s0 = inlined_call_operand.hbm [shape: f32[8,1024], index: 0, kind: input, shape index: {}]   ;;  %s965_s1 = inlined_call_operand.hbm [shape: f32[1024,128], index: 1, kind: input, shape index: {}]   ;;  %s966_s2 = inlined_call_operand.vmem [shape: f32[1,128], index: 2, kind: input, shape index: {}]   ;;  %s967_s3 = inlined_call_operand.hbm [shape: f32[128,256], index: 3, kind: input, shape index: {}]   ;;  %s968_s4 = inlined_call_operand.vmem [shape: f32[1,256], index: 4, kind: input, shape index: {}]   ;;  %s969_s5 = inlined_call_operand.hbm [shape: f32[256,128], index: 5, kind: input, shape index: {}]   ;;  %s970_s6 = inlined_call_operand.vmem [shape: f32[1,128], index: 6, kind: input, shape index: {}]   ;;  %s971_s7 = inlined_call_operand.vmem [shape: f32[1,128], index: 7, kind: input, shape index: {}]   ;;  %s972_s8 = inlined_call_operand.vmem [shape: f32[1,128], index: 8, kind: input, shape index: {}]   ;;  %s973_s9 = inlined_call_operand.hbm [shape: f32[128,128], index: 9, kind: input, shape index: {}]   ;;  %s974_s10 = inlined_call_operand.vmem [shape: f32[1,128], index: 10, kind: input, shape index: {}]   ;;  %s975_s11 = inlined_call_operand.hbm [shape: f32[8,128], index: 11, kind: output, shape index: {}]  }
   0x1   :  { %17 = vsyncpa [#allocation6], 0 }
   0x2   :  { %18 = vsyncpa [#allocation9], 0  ;;  %s35_s19 = sshll.u32 %s965_s1, 4  ;;  %s36_s19 = int_to_ptr.hbm [resolvable:$true] %s35_s19 }
   0x3   :  { %19 = vsyncpa [#allocation4], 0  ;;  %s848_s20 = smov [#allocation5]   ;;  %s65_s24 = sshll.u32 %s969_s5, 4  ;;  %s66_s24 = int_to_ptr.hbm [resolvable:$true] %s65_s24 }
   0x4   :  { %s37_s21 = sshll.u32 %s848_s20, 4  ;;  %s849_s25 = smov 128   ;;  %s38_s21 = int_to_ptr.vmem [resolvable:$true] %s37_s21 }
   0x5   :  { %s850_s26 = smov 8   ;;  %s851_s27 = smov [#allocation8]  }
   0x6   :  { %43 = dma.hbm_to_vmem [thread:$0]  %s36_s19, 16384, %s38_s21, [#allocation6], %s849_s25, %s849_s25, %s850_s26  }
   0x7   :  { %s67_s28 = sshll.u32 %s851_s27, 4  ;;  %s25_s30 = sshll.u32 %s964_s0, 4  ;;  %s68_s28 = int_to_ptr.vmem [resolvable:$true] %s67_s28  ;;  %s26_s30 = int_to_ptr.hbm [resolvable:$true] %s25_s30 }
   0x8   :  { %73 = dma.hbm_to_vmem [thread:$0]  %s66_s24, 4096, %s68_s28, [#allocation9], %s849_s25, %s849_s25, %s850_s26  }
   0x9   :  { %s50_s13 = sshll.u32 %s967_s3, 4  ;;  %s852_s14 = smov [#allocation2]   ;;  %s51_s13 = int_to_ptr.hbm [resolvable:$true] %s50_s13 }
   0xa   :  { %s27_s15 = sshll.u32 %s852_s14, 4  ;;  %s853_s16 = smov [#allocation7]   ;;  %s28_s15 = int_to_ptr.vmem [resolvable:$true] %s27_s15 }
   0xb   :  { %30 = dma.hbm_to_vmem [thread:$0]  %s26_s30, 1024, %s28_s15, [#allocation3]  }
   0xc   :  { %s52_s17 = sshll.u32 %s853_s16, 4  ;;  %s854_s18 = smov 256   ;;  %s53_s17 = int_to_ptr.vmem [resolvable:$true] %s52_s17 }
   0xd   :  { %s855_s0 = smov 16   ;;  %s84_s21 = sshll.u32 %s973_s9, 4  ;;  %s85_s21 = int_to_ptr.hbm [resolvable:$true] %s84_s21 }
   0xe   :  { %58 = dma.hbm_to_vmem [thread:$0]  %s51_s13, 4096, %s53_s17, [#allocation6], %s854_s18, %s854_s18, %s855_s0  }
   0xf   :  { %s856_s22 = smov [#allocation10]  }
  0x10   :  { %s86_s23 = sshll.u32 %s856_s22, 4  ;;  %s87_s23 = int_to_ptr.vmem [resolvable:$true] %s86_s23 }
  0x11   :  { %92 = dma.hbm_to_vmem [thread:$0]  %s85_s21, 2048, %s87_s23, [#allocation9], %s849_s25, %s849_s25, %s850_s26  }
  0x12   :  { %840 = dma.done.wait [#allocation3], 1024  }
  0x13   :  { %841 = vsyncadd [#allocation3], 4294966272 }
  0x14   :  { %842 = dma.done.wait [#allocation6], 20480  }
  0x15   :  { %843 = vsyncadd [#allocation6], 4294946816 }
  0x16   :  { %844 = dma.done.wait [#allocation9], 6144  }
  0x17   :  { %845 = vsyncadd [#allocation9], 4294961152  ;;  %v170_v0 = vld [vmem:[#allocation5 + $0x178] sm:$0xff]  ;;  %v169_v2 = vld [vmem:[#allocation5 + $0x170] sm:$0xff]  ;;  %s858_s30 = smov [#allocation11]  }
  0x18   :  { %v138_v1 = vld [vmem:[#allocation5 + $0x78] sm:$0xff]  ;;  %295 = vmatpush.msra.mxu2 %v170_v0  ;;  %v137_v4 = vld [vmem:[#allocation5 + $0x70] sm:$0xff]  ;;  %v168_v6 = vld [vmem:[#allocation5 + $0x168] sm:$0xff]  ;;  %s662_s5 = sshll.u32 %s858_s30, 4  ;;  %s663_s5 = int_to_ptr.vmem [resolvable:$true] %s662_s5 }
  0x19   :  { %255 = vmatpush.msra.mxu0 %v138_v1  ;;  %v186_v3 = vld [vmem:[#allocation5 + $0x1f8] sm:$0xff]  ;;  %v185_v7 = vld [vmem:[#allocation5 + $0x1f0] sm:$0xff]  ;;  %v136_v8 = vld [vmem:[#allocation5 + $0x68] sm:$0xff] }
  0x1a   :  { %v154_v5 = vld [vmem:[#allocation5 + $0xf8] sm:$0xff]  ;;  %315 = vmatpush.msra.mxu3 %v186_v3  ;;  %296 = vmatpush.msra.mxu2 %v169_v2  ;;  %v153_v9 = vld [vmem:[#allocation5 + $0xf0] sm:$0xff]  ;;  %v184_v10 = vld [vmem:[#allocation5 + $0x1e8] sm:$0xff] }
  0x1b   :  { %275 = vmatpush.msra.mxu1 %v154_v5  ;;  %256 = vmatpush.msra.mxu0 %v137_v4  ;;  %v167_v11 = vld [vmem:[#allocation5 + $0x160] sm:$0xff]  ;;  %v152_v13 = vld [vmem:[#allocation5 + $0xe8] sm:$0xff]  ;;  %v166_v16 = vld [vmem:[#allocation5 + $0x158] sm:$0xff] }
  0x1c   :  { %316 = vmatpush.msra.mxu3 %v185_v7  ;;  %v135_v12 = vld [vmem:[#allocation5 + $0x60] sm:$0xff]  ;;  %297 = vmatpush.msra.mxu2 %v168_v6  ;;  %v134_v17 = vld [vmem:[#allocation5 + $0x58] sm:$0xff]  ;;  %v165_v20 = vld [vmem:[#allocation5 + $0x150] sm:$0xff] }
  0x1d   :  { %276 = vmatpush.msra.mxu1 %v153_v9  ;;  %257 = vmatpush.msra.mxu0 %v136_v8  ;;  %v183_v14 = vld [vmem:[#allocation5 + $0x1e0] sm:$0xff]  ;;  %v182_v18 = vld [vmem:[#allocation5 + $0x1d8] sm:$0xff]  ;;  %v133_v21 = vld [vmem:[#allocation5 + $0x50] sm:$0xff] }
  0x1e   :  { %v151_v15 = vld [vmem:[#allocation5 + $0xe0] sm:$0xff]  ;;  %317 = vmatpush.msra.mxu3 %v184_v10  ;;  %298 = vmatpush.msra.mxu2 %v167_v11  ;;  %v150_v19 = vld [vmem:[#allocation5 + $0xd8] sm:$0xff]  ;;  %v181_v22 = vld [vmem:[#allocation5 + $0x1d0] sm:$0xff] }
  0x1f   :  { %277 = vmatpush.msra.mxu1 %v152_v13  ;;  %258 = vmatpush.msra.mxu0 %v135_v12  ;;  %v149_v23 = vld [vmem:[#allocation5 + $0xd0] sm:$0xff]  ;;  %v164_v24 = vld [vmem:[#allocation5 + $0x148] sm:$0xff]  ;;  %v163_v28 = vld [vmem:[#allocation5 + $0x140] sm:$0xff] }
  0x20   :  { %318 = vmatpush.msra.mxu3 %v183_v14  ;;  %299 = vmatpush.msra.mxu2 %v166_v16  ;;  %v132_v25 = vld [vmem:[#allocation5 + $0x48] sm:$0xff]  ;;  %v131_v29 = vld [vmem:[#allocation5 + $0x40] sm:$0xff]  ;;  %v162_v32 = vld [vmem:[#allocation5 + $0x138] sm:$0xff] }
  0x21   :  { %278 = vmatpush.msra.mxu1 %v151_v15  ;;  %259 = vmatpush.msra.mxu0 %v134_v17  ;;  %v180_v26 = vld [vmem:[#allocation5 + $0x1c8] sm:$0xff]  ;;  %v179_v30 = vld [vmem:[#allocation5 + $0x1c0] sm:$0xff]  ;;  %v130_v33 = vld [vmem:[#allocation5 + $0x38] sm:$0xff] }
  0x22   :  { %319 = vmatpush.msra.mxu3 %v182_v18  ;;  %300 = vmatpush.msra.mxu2 %v165_v20  ;;  %v148_v27 = vld [vmem:[#allocation5 + $0xc8] sm:$0xff]  ;;  %v147_v31 = vld [vmem:[#allocation5 + $0xc0] sm:$0xff]  ;;  %v178_v34 = vld [vmem:[#allocation5 + $0x1b8] sm:$0xff] }
  0x23   :  { %279 = vmatpush.msra.mxu1 %v150_v19  ;;  %260 = vmatpush.msra.mxu0 %v133_v21  ;;  %v146_v35 = vld [vmem:[#allocation5 + $0xb8] sm:$0xff]  ;;  %v161_v36 = vld [vmem:[#allocation5 + $0x130] sm:$0xff]  ;;  %v160_v40 = vld [vmem:[#allocation5 + $0x128] sm:$0xff] }
  0x24   :  { %320 = vmatpush.msra.mxu3 %v181_v22  ;;  %301 = vmatpush.msra.mxu2 %v164_v24  ;;  %v129_v37 = vld [vmem:[#allocation5 + $0x30] sm:$0xff]  ;;  %v128_v41 = vld [vmem:[#allocation5 + $0x28] sm:$0xff]  ;;  %v159_v44 = vld [vmem:[#allocation5 + $0x120] sm:$0xff] }
  0x25   :  { %280 = vmatpush.msra.mxu1 %v149_v23  ;;  %261 = vmatpush.msra.mxu0 %v132_v25  ;;  %v177_v38 = vld [vmem:[#allocation5 + $0x1b0] sm:$0xff]  ;;  %v176_v42 = vld [vmem:[#allocation5 + $0x1a8] sm:$0xff]  ;;  %v127_v45 = vld [vmem:[#allocation5 + $0x20] sm:$0xff] }
  0x26   :  { %321 = vmatpush.msra.mxu3 %v180_v26  ;;  %302 = vmatpush.msra.mxu2 %v163_v28  ;;  %v145_v39 = vld [vmem:[#allocation5 + $0xb0] sm:$0xff]  ;;  %v144_v43 = vld [vmem:[#allocation5 + $0xa8] sm:$0xff]  ;;  %v175_v46 = vld [vmem:[#allocation5 + $0x1a0] sm:$0xff] }
  0x27   :  { %281 = vmatpush.msra.mxu1 %v148_v27  ;;  %262 = vmatpush.msra.mxu0 %v131_v29  ;;  %v143_v47 = vld [vmem:[#allocation5 + $0xa0] sm:$0xff]  ;;  %v158_v48 = vld [vmem:[#allocation5 + $0x118] sm:$0xff]  ;;  %v157_v52 = vld [vmem:[#allocation5 + $0x110] sm:$0xff] }
  0x28   :  { %322 = vmatpush.msra.mxu3 %v179_v30  ;;  %303 = vmatpush.msra.mxu2 %v162_v32  ;;  %v126_v49 = vld [vmem:[#allocation5 + $0x18] sm:$0xff]  ;;  %v125_v53 = vld [vmem:[#allocation5 + $0x10] sm:$0xff]  ;;  %v156_v56 = vld [vmem:[#allocation5 + $0x108] sm:$0xff] }
  0x29   :  { %282 = vmatpush.msra.mxu1 %v147_v31  ;;  %263 = vmatpush.msra.mxu0 %v130_v33  ;;  %v174_v50 = vld [vmem:[#allocation5 + $0x198] sm:$0xff]  ;;  %v173_v54 = vld [vmem:[#allocation5 + $0x190] sm:$0xff]  ;;  %v124_v57 = vld [vmem:[#allocation5 + $0x8] sm:$0xff] }
  0x2a   :  { %323 = vmatpush.msra.mxu3 %v178_v34  ;;  %304 = vmatpush.msra.mxu2 %v161_v36  ;;  %v142_v51 = vld [vmem:[#allocation5 + $0x98] sm:$0xff]  ;;  %v141_v55 = vld [vmem:[#allocation5 + $0x90] sm:$0xff]  ;;  %v172_v58 = vld [vmem:[#allocation5 + $0x188] sm:$0xff] }
  0x2b   :  { %283 = vmatpush.msra.mxu1 %v146_v35  ;;  %264 = vmatpush.msra.mxu0 %v129_v37  ;;  %v140_v59 = vld [vmem:[#allocation5 + $0x88] sm:$0xff]  ;;  %v155_v60 = vld [vmem:[#allocation5 + $0x100] sm:$0xff]  ;;  %v234_v62 = vld [vmem:[#allocation5 + $0x378] sm:$0xff] }
  0x2c   :  { %324 = vmatpush.msra.mxu3 %v177_v38  ;;  %305 = vmatpush.msra.mxu2 %v160_v40  ;;  %v123_v61 = vld [vmem:[#allocation5] sm:$0xff]  ;;  %v202_v0 = vld [vmem:[#allocation5 + $0x278] sm:$0xff]  ;;  %v233_v2 = vld [vmem:[#allocation5 + $0x370] sm:$0xff] }
  0x2d   :  { %284 = vmatpush.msra.mxu1 %v145_v39  ;;  %265 = vmatpush.msra.mxu0 %v128_v41  ;;  %v171_v63 = vld [vmem:[#allocation5 + $0x180] sm:$0xff]  ;;  %v250_v1 = vld [vmem:[#allocation5 + $0x3f8] sm:$0xff]  ;;  %v201_v4 = vld [vmem:[#allocation5 + $0x270] sm:$0xff] }
  0x2e   :  { %325 = vmatpush.msra.mxu3 %v176_v42  ;;  %306 = vmatpush.msra.mxu2 %v159_v44  ;;  %v139_v3 = vld [vmem:[#allocation5 + $0x80] sm:$0xff]  ;;  %v218_v5 = vld [vmem:[#allocation5 + $0x2f8] sm:$0xff]  ;;  %v232_v6 = vld [vmem:[#allocation5 + $0x368] sm:$0xff] }
  0x2f   :  { %285 = vmatpush.msra.mxu1 %v144_v43  ;;  %266 = vmatpush.msra.mxu0 %v127_v45  ;;  %v249_v7 = vld [vmem:[#allocation5 + $0x3f0] sm:$0xff]  ;;  %v200_v8 = vld [vmem:[#allocation5 + $0x268] sm:$0xff]  ;;  %v231_v10 = vld [vmem:[#allocation5 + $0x360] sm:$0xff] }
  0x30   :  { %326 = vmatpush.msra.mxu3 %v175_v46  ;;  %307 = vmatpush.msra.mxu2 %v158_v48  ;;  %v217_v9 = vld [vmem:[#allocation5 + $0x2f0] sm:$0xff]  ;;  %v248_v11 = vld [vmem:[#allocation5 + $0x3e8] sm:$0xff]  ;;  %v199_v12 = vld [vmem:[#allocation5 + $0x260] sm:$0xff] }
  0x31   :  { %286 = vmatpush.msra.mxu1 %v143_v47  ;;  %267 = vmatpush.msra.mxu0 %v126_v49  ;;  %v216_v13 = vld [vmem:[#allocation5 + $0x2e8] sm:$0xff]  ;;  %v230_v14 = vld [vmem:[#allocation5 + $0x358] sm:$0xff]  ;;  %v247_v15 = vld [vmem:[#allocation5 + $0x3e0] sm:$0xff] }
  0x32   :  { %327 = vmatpush.msra.mxu3 %v174_v50  ;;  %308 = vmatpush.msra.mxu2 %v157_v52  ;;  %v198_v16 = vld [vmem:[#allocation5 + $0x258] sm:$0xff]  ;;  %v215_v17 = vld [vmem:[#allocation5 + $0x2e0] sm:$0xff]  ;;  %v229_v18 = vld [vmem:[#allocation5 + $0x350] sm:$0xff] }
  0x33   :  { %287 = vmatpush.msra.mxu1 %v142_v51  ;;  %268 = vmatpush.msra.mxu0 %v125_v53  ;;  %v246_v19 = vld [vmem:[#allocation5 + $0x3d8] sm:$0xff]  ;;  %v197_v20 = vld [vmem:[#allocation5 + $0x250] sm:$0xff]  ;;  %v228_v22 = vld [vmem:[#allocation5 + $0x348] sm:$0xff] }
  0x34   :  { %328 = vmatpush.msra.mxu3 %v173_v54  ;;  %309 = vmatpush.msra.mxu2 %v156_v56  ;;  %v214_v21 = vld [vmem:[#allocation5 + $0x2d8] sm:$0xff]  ;;  %v245_v23 = vld [vmem:[#allocation5 + $0x3d0] sm:$0xff]  ;;  %v196_v24 = vld [vmem:[#allocation5 + $0x248] sm:$0xff] }
  0x35   :  { %288 = vmatpush.msra.mxu1 %v141_v55  ;;  %269 = vmatpush.msra.mxu0 %v124_v57  ;;  %v213_v25 = vld [vmem:[#allocation5 + $0x2d0] sm:$0xff]  ;;  %v227_v26 = vld [vmem:[#allocation5 + $0x340] sm:$0xff]  ;;  %v244_v27 = vld [vmem:[#allocation5 + $0x3c8] sm:$0xff] }
  0x36   :  { %329 = vmatpush.msra.mxu3 %v172_v58  ;;  %310 = vmatpush.msra.mxu2 %v155_v60  ;;  %v195_v28 = vld [vmem:[#allocation5 + $0x240] sm:$0xff]  ;;  %v212_v29 = vld [vmem:[#allocation5 + $0x2c8] sm:$0xff]  ;;  %v226_v30 = vld [vmem:[#allocation5 + $0x338] sm:$0xff] }
  0x37   :  { %289 = vmatpush.msra.mxu1 %v140_v59  ;;  %270 = vmatpush.msra.mxu0 %v123_v61  ;;  %v243_v31 = vld [vmem:[#allocation5 + $0x3c0] sm:$0xff]  ;;  %v194_v32 = vld [vmem:[#allocation5 + $0x238] sm:$0xff]  ;;  %v225_v34 = vld [vmem:[#allocation5 + $0x330] sm:$0xff] }
  0x38   :  { %375 = vmatpush.msrb.mxu2 %v234_v62  ;;  %330 = vmatpush.msra.mxu3 %v171_v63  ;;  %v211_v33 = vld [vmem:[#allocation5 + $0x2c0] sm:$0xff]  ;;  %v242_v35 = vld [vmem:[#allocation5 + $0x3b8] sm:$0xff]  ;;  %v193_v36 = vld [vmem:[#allocation5 + $0x230] sm:$0xff] }
  0x39   :  { %335 = vmatpush.msrb.mxu0 %v202_v0  ;;  %290 = vmatpush.msra.mxu1 %v139_v3  ;;  %v210_v37 = vld [vmem:[#allocation5 + $0x2b8] sm:$0xff]  ;;  %v224_v38 = vld [vmem:[#allocation5 + $0x328] sm:$0xff]  ;;  %v241_v39 = vld [vmem:[#allocation5 + $0x3b0] sm:$0xff] }
  0x3a   :  { %395 = vmatpush.msrb.mxu3 %v250_v1  ;;  %376 = vmatpush.msrb.mxu2 %v233_v2  ;;  %v192_v40 = vld [vmem:[#allocation5 + $0x228] sm:$0xff]  ;;  %v209_v41 = vld [vmem:[#allocation5 + $0x2b0] sm:$0xff]  ;;  %v223_v42 = vld [vmem:[#allocation5 + $0x320] sm:$0xff] }
  0x3b   :  { %336 = vmatpush.msrb.mxu0 %v201_v4  ;;  %355 = vmatpush.msrb.mxu1 %v218_v5  ;;  %v240_v43 = vld [vmem:[#allocation5 + $0x3a8] sm:$0xff]  ;;  %v117_v44 = vld [vmem:[#allocation2 + $0x10] sm:$0xff]  ;;  %v191_v45 = vld [vmem:[#allocation5 + $0x220] sm:$0xff] }
  0x3c   :  { %377 = vmatpush.msrb.mxu2 %v232_v6  ;;  %396 = vmatpush.msrb.mxu3 %v249_v7  ;;  %v208_v46 = vld [vmem:[#allocation5 + $0x2a8] sm:$0xff]  ;;  %v222_v47 = vld [vmem:[#allocation5 + $0x318] sm:$0xff]  ;;  %v239_v48 = vld [vmem:[#allocation5 + $0x3a0] sm:$0xff] }
  0x3d   :  { %337 = vmatpush.msrb.mxu0 %v200_v8  ;;  %356 = vmatpush.msrb.mxu1 %v217_v9  ;;  %v115_v49 = vld [vmem:[#allocation2] sm:$0xff]  ;;  %v118_v50 = vld [vmem:[#allocation2 + $0x18] sm:$0xff]  ;;  %v221_v53 = vld [vmem:[#allocation5 + $0x310] sm:$0xff] }
  0x3e   :  { %378 = vmatpush.msrb.mxu2 %v231_v10  ;;  %397 = vmatpush.msrb.mxu3 %v248_v11  ;;  %v190_v51 = vld [vmem:[#allocation5 + $0x218] sm:$0xff]  ;;  %v207_v52 = vld [vmem:[#allocation5 + $0x2a0] sm:$0xff]  ;;  %v116_v55 = vld [vmem:[#allocation2 + $0x8] sm:$0xff] }
  0x3f   :  { %338 = vmatpush.msrb.mxu0 %v199_v12  ;;  %357 = vmatpush.msrb.mxu1 %v216_v13  ;;  %v238_v54 = vld [vmem:[#allocation5 + $0x398] sm:$0xff]  ;;  %v189_v56 = vld [vmem:[#allocation5 + $0x210] sm:$0xff]  ;;  %v220_v58 = vld [vmem:[#allocation5 + $0x308] sm:$0xff] }
  0x40   :  { %379 = vmatpush.msrb.mxu2 %v230_v14  ;;  %398 = vmatpush.msrb.mxu3 %v247_v15  ;;  %v206_v57 = vld [vmem:[#allocation5 + $0x298] sm:$0xff]  ;;  %v237_v59 = vld [vmem:[#allocation5 + $0x390] sm:$0xff]  ;;  %v188_v60 = vld [vmem:[#allocation5 + $0x208] sm:$0xff] }
  0x41   :  { %339 = vmatpush.msrb.mxu0 %v198_v16  ;;  %358 = vmatpush.msrb.mxu1 %v215_v17  ;;  %v205_v61 = vld [vmem:[#allocation5 + $0x290] sm:$0xff]  ;;  %v219_v62 = vld [vmem:[#allocation5 + $0x300] sm:$0xff]  ;;  %v236_v63 = vld [vmem:[#allocation5 + $0x388] sm:$0xff] }
  0x42   :  { %380 = vmatpush.msrb.mxu2 %v229_v18  ;;  %399 = vmatpush.msrb.mxu3 %v246_v19  ;;  %v121_v0 = vld [vmem:[#allocation2 + $0x30] sm:$0xff]  ;;  %v187_v1 = vld [vmem:[#allocation5 + $0x200] sm:$0xff]  ;;  %v204_v2 = vld [vmem:[#allocation5 + $0x288] sm:$0xff] }
  0x43   :  { %340 = vmatpush.msrb.mxu0 %v197_v20  ;;  %359 = vmatpush.msrb.mxu1 %v214_v21  ;;  %v235_v3 = vld [vmem:[#allocation5 + $0x380] sm:$0xff]  ;;  %v122_v5 = vld [vmem:[#allocation2 + $0x38] sm:$0xff]  ;;  %v446_v7 = vld [vmem:[#allocation7 + $0xf0] sm:$0xff] }
  0x44   :  { %381 = vmatpush.msrb.mxu2 %v228_v22  ;;  %400 = vmatpush.msrb.mxu3 %v245_v23  ;;  %v119_v4 = vld [vmem:[#allocation2 + $0x20] sm:$0xff]  ;;  %v120_v8 = vld [vmem:[#allocation2 + $0x28] sm:$0xff]  ;;  %v447_v9 = vld [vmem:[#allocation7 + $0xf8] sm:$0xff] }
  0x45   :  { %341 = vmatpush.msrb.mxu0 %v196_v24  ;;  %360 = vmatpush.msrb.mxu1 %v213_v25  ;;  %v203_v6 = vld [vmem:[#allocation5 + $0x280] sm:$0xff]  ;;  %v445_v11 = vld [vmem:[#allocation7 + $0xe8] sm:$0xff]  ;;  %v442_v12 = vld [vmem:[#allocation7 + $0xd0] sm:$0xff] }
  0x46   :  { %382 = vmatpush.msrb.mxu2 %v227_v26  ;;  %401 = vmatpush.msrb.mxu3 %v244_v27  ;;  %v444_v10 = vld [vmem:[#allocation7 + $0xe0] sm:$0xff]  ;;  %v443_v13 = vld [vmem:[#allocation7 + $0xd8] sm:$0xff]  ;;  %v441_v15 = vld [vmem:[#allocation7 + $0xc8] sm:$0xff] }
  0x47   :  { %342 = vmatpush.msrb.mxu0 %v195_v28  ;;  %361 = vmatpush.msrb.mxu1 %v212_v29  ;;  %v440_v14 = vld [vmem:[#allocation7 + $0xc0] sm:$0xff]  ;;  %v438_v16 = vld [vmem:[#allocation7 + $0xb0] sm:$0xff]  ;;  %v439_v17 = vld [vmem:[#allocation7 + $0xb8] sm:$0xff] }
  0x48   :  { %383 = vmatpush.msrb.mxu2 %v226_v30  ;;  %402 = vmatpush.msrb.mxu3 %v243_v31  ;;  %v436_v18 = vld [vmem:[#allocation7 + $0xa0] sm:$0xff]  ;;  %v437_v19 = vld [vmem:[#allocation7 + $0xa8] sm:$0xff]  ;;  %v434_v20 = vld [vmem:[#allocation7 + $0x90] sm:$0xff] }
  0x49   :  { %343 = vmatpush.msrb.mxu0 %v194_v32  ;;  %362 = vmatpush.msrb.mxu1 %v211_v33  ;;  %v435_v21 = vld [vmem:[#allocation7 + $0x98] sm:$0xff]  ;;  %v432_v22 = vld [vmem:[#allocation7 + $0x80] sm:$0xff]  ;;  %v433_v23 = vld [vmem:[#allocation7 + $0x88] sm:$0xff] }
  0x4a   :  { %384 = vmatpush.msrb.mxu2 %v225_v34  ;;  %403 = vmatpush.msrb.mxu3 %v242_v35  ;;  %v430_v24 = vld [vmem:[#allocation7 + $0x70] sm:$0xff]  ;;  %v431_v25 = vld [vmem:[#allocation7 + $0x78] sm:$0xff]  ;;  %v428_v26 = vld [vmem:[#allocation7 + $0x60] sm:$0xff] }
  0x4b   :  { %344 = vmatpush.msrb.mxu0 %v193_v36  ;;  %363 = vmatpush.msrb.mxu1 %v210_v37  ;;  %v429_v27 = vld [vmem:[#allocation7 + $0x68] sm:$0xff]  ;;  %v426_v28 = vld [vmem:[#allocation7 + $0x50] sm:$0xff]  ;;  %v427_v29 = vld [vmem:[#allocation7 + $0x58] sm:$0xff] }
  0x4c   :  { %385 = vmatpush.msrb.mxu2 %v224_v38  ;;  %404 = vmatpush.msrb.mxu3 %v241_v39  ;;  %v424_v30 = vld [vmem:[#allocation7 + $0x40] sm:$0xff]  ;;  %v425_v31 = vld [vmem:[#allocation7 + $0x48] sm:$0xff]  ;;  %v422_v32 = vld [vmem:[#allocation7 + $0x30] sm:$0xff] }
  0x4d   :  { %345 = vmatpush.msrb.mxu0 %v192_v40  ;;  %364 = vmatpush.msrb.mxu1 %v209_v41  ;;  %v423_v33 = vld [vmem:[#allocation7 + $0x38] sm:$0xff]  ;;  %v420_v34 = vld [vmem:[#allocation7 + $0x20] sm:$0xff]  ;;  %v421_v35 = vld [vmem:[#allocation7 + $0x28] sm:$0xff] }
  0x4e   :  { %386 = vmatpush.msrb.mxu2 %v223_v42  ;;  %405 = vmatpush.msrb.mxu3 %v240_v43  ;;  %v418_v36 = vld [vmem:[#allocation7 + $0x10] sm:$0xff]  ;;  %v419_v37 = vld [vmem:[#allocation7 + $0x18] sm:$0xff]  ;;  %v416_v38 = vld [vmem:[#allocation7] sm:$0xff] }
  0x4f   :  { %311 = vmatmul.f32.vlgmr.msra.gmra.mxu2 %v117_v44  ;;  %346 = vmatpush.msrb.mxu0 %v191_v45  ;;  %v417_v39 = vld [vmem:[#allocation7 + $0x8] sm:$0xff]  ;;  %v509_v40 = vld [vmem:[#allocation8 + $0x78] sm:$0xff]  ;;  %v508_v42 = vld [vmem:[#allocation8 + $0x70] sm:$0xff] }
  0x50   :  { %365 = vmatpush.msrb.mxu1 %v208_v46  ;;  %387 = vmatpush.msrb.mxu2 %v222_v47  ;;  %v525_v41 = vld [vmem:[#allocation8 + $0xf8] sm:$0xff]  ;;  %v524_v43 = vld [vmem:[#allocation8 + $0xf0] sm:$0xff]  ;;  %v507_v44 = vld [vmem:[#allocation8 + $0x68] sm:$0xff] }
  0x51   :  { %406 = vmatpush.msrb.mxu3 %v239_v48  ;;  %271 = vmatmul.f32.vlgmr.msra.gmra.mxu0 %v115_v49  ;;  %v523_v45 = vld [vmem:[#allocation8 + $0xe8] sm:$0xff]  ;;  %v506_v46 = vld [vmem:[#allocation8 + $0x60] sm:$0xff]  ;;  %v505_v48 = vld [vmem:[#allocation8 + $0x58] sm:$0xff] }
  0x52   :  { %331 = vmatmul.f32.vlgmr.msra.gmra.mxu3 %v118_v50  ;;  %347 = vmatpush.msrb.mxu0 %v190_v51  ;;  %v522_v47 = vld [vmem:[#allocation8 + $0xe0] sm:$0xff]  ;;  %v521_v49 = vld [vmem:[#allocation8 + $0xd8] sm:$0xff]  ;;  %v504_v51 = vld [vmem:[#allocation8 + $0x50] sm:$0xff] }
  0x53   :  { %366 = vmatpush.msrb.mxu1 %v207_v52  ;;  %388 = vmatpush.msrb.mxu2 %v221_v53  ;;  %v687_v50 = vld [vmem:[%s966_s2] ss:$0 sm:$0xff]  ;;  %v520_v52 = vld [vmem:[#allocation8 + $0xd0] sm:$0xff]  ;;  %v503_v53 = vld [vmem:[#allocation8 + $0x48] sm:$0xff] }
  0x54   :  { %407 = vmatpush.msrb.mxu3 %v238_v54  ;;  %291 = vmatmul.f32.vlgmr.msra.gmra.mxu1 %v116_v55  ;;  %v519_v54 = vld [vmem:[#allocation8 + $0xc8] sm:$0xff] }
  0x55   :  { %348 = vmatpush.msrb.mxu0 %v189_v56  ;;  %367 = vmatpush.msrb.mxu1 %v206_v57  ;;  %v502_v57 = vld [vmem:[#allocation8 + $0x40] sm:$0xff] }
  0x56   :  { %389 = vmatpush.msrb.mxu2 %v220_v58  ;;  %408 = vmatpush.msrb.mxu3 %v237_v59  ;;  %v518_v58 = vld [vmem:[#allocation8 + $0xc0] sm:$0xff] }
  0x57   :  { %349 = vmatpush.msrb.mxu0 %v188_v60  ;;  %368 = vmatpush.msrb.mxu1 %v205_v61  ;;  %v501_v60 = vld [vmem:[#allocation8 + $0x38] sm:$0xff] }
  0x58   :  { %390 = vmatpush.msrb.mxu2 %v219_v62  ;;  %409 = vmatpush.msrb.mxu3 %v236_v63  ;;  %v517_v61 = vld [vmem:[#allocation8 + $0xb8] sm:$0xff] }
  0x59   :  { %391 = vmatmul.f32.vlgmr.msrb.gmra.mxu2 %v121_v0  ;;  %350 = vmatpush.msrb.mxu0 %v187_v1  ;;  %v500_v0 = vld [vmem:[#allocation8 + $0x30] sm:$0xff] }
  0x5a   :  { %369 = vmatpush.msrb.mxu1 %v204_v2  ;;  %410 = vmatpush.msrb.mxu3 %v235_v3  ;;  %v516_v1 = vld [vmem:[#allocation8 + $0xb0] sm:$0xff] }
  0x5b   :  { %351 = vmatmul.f32.vlgmr.msrb.gmra.mxu0 %v119_v4  ;;  %411 = vmatmul.f32.vlgmr.msrb.gmra.mxu3 %v122_v5  ;;  %v499_v4 = vld [vmem:[#allocation8 + $0x28] sm:$0xff] }
  0x5c   :  { %370 = vmatpush.msrb.mxu1 %v203_v6  ;;  %454 = vmatpush.msra.mxu0 %v446_v7  ;;  %v515_v5 = vld [vmem:[#allocation8 + $0xa8] sm:$0xff]  ;;  %v498_v7 = vld [vmem:[#allocation8 + $0x20] sm:$0xff] }
  0x5d   :  { %371 = vmatmul.f32.vlgmr.msrb.gmra.mxu1 %v120_v8  ;;  %530 = vmatpush.msra.mxu2 %v509_v40  ;;  %v514_v8 = vld [vmem:[#allocation8 + $0xa0] sm:$0xff] }
  0x5e   :  { %474 = vmatpush.msra.mxu1 %v447_v9  ;;  %455 = vmatpush.msra.mxu0 %v444_v10 }
  0x5f   :  { %550 = vmatpush.msra.mxu3 %v525_v41  ;;  %531 = vmatpush.msra.mxu2 %v508_v42 }
  0x60   :  { %475 = vmatpush.msra.mxu1 %v445_v11  ;;  %456 = vmatpush.msra.mxu0 %v442_v12  ;;  %v497_v11 = vld [vmem:[#allocation8 + $0x18] sm:$0xff] }
  0x61   :  { %551 = vmatpush.msra.mxu3 %v524_v43  ;;  %532 = vmatpush.msra.mxu2 %v507_v44  ;;  %v513_v12 = vld [vmem:[#allocation8 + $0x98] sm:$0xff]  ;;  %v630_v43 = vld [vmem:[#allocation10 + $0x70] sm:$0xff] }
  0x62   :  { %476 = vmatpush.msra.mxu1 %v443_v13  ;;  %457 = vmatpush.msra.mxu0 %v440_v14 }
  0x63   :  { %552 = vmatpush.msra.mxu3 %v523_v45  ;;  %533 = vmatpush.msra.mxu2 %v506_v46  ;;  %v629_v45 = vld [vmem:[#allocation10 + $0x68] sm:$0xff] }
  0x64   :  { %477 = vmatpush.msra.mxu1 %v441_v15  ;;  %458 = vmatpush.msra.mxu0 %v438_v16  ;;  %v496_v15 = vld [vmem:[#allocation8 + $0x10] sm:$0xff] }
  0x65   :  { %553 = vmatpush.msra.mxu3 %v522_v47  ;;  %534 = vmatpush.msra.mxu2 %v505_v48  ;;  %v512_v16 = vld [vmem:[#allocation8 + $0x90] sm:$0xff]  ;;  %v628_v48 = vld [vmem:[#allocation10 + $0x60] sm:$0xff] }
  0x66   :  { %478 = vmatpush.msra.mxu1 %v439_v17  ;;  %459 = vmatpush.msra.mxu0 %v436_v18 }
  0x67   :  { %554 = vmatpush.msra.mxu3 %v521_v49  ;;  %535 = vmatpush.msra.mxu2 %v504_v51 }
  0x68   :  { %479 = vmatpush.msra.mxu1 %v437_v19  ;;  %460 = vmatpush.msra.mxu0 %v434_v20 }
  0x69   :  { %555 = vmatpush.msra.mxu3 %v520_v52  ;;  %536 = vmatpush.msra.mxu2 %v503_v53  ;;  %v626_v53 = vld [vmem:[#allocation10 + $0x50] sm:$0xff] }
  0x6a   :  { %480 = vmatpush.msra.mxu1 %v435_v21  ;;  %461 = vmatpush.msra.mxu0 %v432_v22  ;;  %v495_v22 = vld [vmem:[#allocation8 + $0x8] sm:$0xff] }
  0x6b   :  { %556 = vmatpush.msra.mxu3 %v519_v54  ;;  %537 = vmatpush.msra.mxu2 %v502_v57 }
  0x6c   :  { %481 = vmatpush.msra.mxu1 %v433_v23  ;;  %462 = vmatpush.msra.mxu0 %v430_v24  ;;  %v511_v23 = vld [vmem:[#allocation8 + $0x88] sm:$0xff]  ;;  %v494_v24 = vld [vmem:[#allocation8] sm:$0xff] }
  0x6d   :  { %557 = vmatpush.msra.mxu3 %v518_v58  ;;  %538 = vmatpush.msra.mxu2 %v501_v60  ;;  %v624_v58 = vld [vmem:[#allocation10 + $0x40] sm:$0xff]  ;;  %v623_v60 = vld [vmem:[#allocation10 + $0x38] sm:$0xff] }
  0x6e   :  { %482 = vmatpush.msra.mxu1 %v431_v25  ;;  %463 = vmatpush.msra.mxu0 %v428_v26  ;;  %v510_v25 = vld [vmem:[#allocation8 + $0x80] sm:$0xff] }
  0x6f   :  { %558 = vmatpush.msra.mxu3 %v517_v61  ;;  %539 = vmatpush.msra.mxu2 %v500_v0  ;;  %v448_v26 = vld [vmem:[%s968_s4] sm:$0x3]  ;;  %v621_v0 = vld [vmem:[#allocation10 + $0x28] sm:$0xff] }
  0x70   :  { %483 = vmatpush.msra.mxu1 %v429_v27  ;;  %464 = vmatpush.msra.mxu0 %v426_v28  ;;  %v450_v27 = vperm.slane %v448_v26, 0  ;;  %v451_v28 = vperm.slane %v448_v26, 1 }
  0x71   :  { %559 = vmatpush.msra.mxu3 %v516_v1  ;;  %540 = vmatpush.msra.mxu2 %v499_v4  ;;  %v619_v4 = vld [vmem:[#allocation10 + $0x18] sm:$0xff] }
  0x72   :  { %484 = vmatpush.msra.mxu1 %v427_v29  ;;  %465 = vmatpush.msra.mxu0 %v424_v30 }
  0x73   :  { %560 = vmatpush.msra.mxu3 %v515_v5  ;;  %541 = vmatpush.msra.mxu2 %v498_v7  ;;  %v617_v7 = vld [vmem:[#allocation10 + $0x8] sm:$0xff] }
  0x74   :  { %485 = vmatpush.msra.mxu1 %v425_v31  ;;  %466 = vmatpush.msra.mxu0 %v422_v32 }
  0x75   :  { %561 = vmatpush.msra.mxu3 %v514_v8  ;;  %542 = vmatpush.msra.mxu2 %v497_v11 }
  0x76   :  { %486 = vmatpush.msra.mxu1 %v423_v33  ;;  %467 = vmatpush.msra.mxu0 %v420_v34  ;;  %v857_v33 = vmov 8.0  }
  0x77   :  { %562 = vmatpush.msra.mxu3 %v513_v12  ;;  %543 = vmatpush.msra.mxu2 %v496_v15  ;;  %692 = vrcp.f32 %v857_v33 }
  0x78   :  { %487 = vmatpush.msra.mxu1 %v421_v35  ;;  %468 = vmatpush.msra.mxu0 %v418_v36  ;;  %v688_v35 = vld [vmem:[%s970_s6] ss:$0 sm:$0xff] }
  0x79   :  { %563 = vmatpush.msra.mxu3 %v512_v16  ;;  %544 = vmatpush.msra.mxu2 %v495_v22 }
  0x7a   :  { %488 = vmatpush.msra.mxu1 %v419_v37  ;;  %469 = vmatpush.msra.mxu0 %v416_v38 }
  0x7b   :  { %564 = vmatpush.msra.mxu3 %v511_v23  ;;  %545 = vmatpush.msra.mxu2 %v494_v24  ;;  %v690_v23 = vld [vmem:[%s972_s8] ss:$0 sm:$0xff] }
  0x7c   :  { %489 = vmatpush.msra.mxu1 %v417_v39  ;;  %v631_v39 = vld [vmem:[#allocation10 + $0x78] sm:$0xff] }
  0x7d   :  { %565 = vmatpush.msra.mxu3 %v510_v25  ;;  %v693_v34 = vpop.eup %692  ;;  %636 = vmatpush.msrb.mxu0 %v631_v39 }
  0x7e   :  { %v577_v36 = vmul.f32 8.0, %v693_v34  ;;  %vm581_vm0 = vweird.f32 %v693_v34 }
  0x7f   :  { %637 = vmatpush.msrb.mxu0 %v630_v43 }
  0x80   :  { %v578_v41 = vsub.f32 1.0, %v577_v36 }
  0x81   :  { %638 = vmatpush.msrb.mxu0 %v629_v45 }
  0x82   :  { %v579_v46 = vmul.f32 %v693_v34, %v578_v41 }
  0x83   :  { %639 = vmatpush.msrb.mxu0 %v628_v48 }
  0x84   :  { %v580_v51 = vadd.f32 %v693_v34, %v579_v46 }
  0xce   :  { %v272_v55 = vpop.f32.mrf.mxu0 }
  0xcf   :  { %v273_v56 = vadd.f32 %v687_v50, %v272_v55  ;;  %v627_v50 = vld [vmem:[#allocation10 + $0x58] sm:$0xff]  ;;  %v625_v55 = vld [vmem:[#allocation10 + $0x48] sm:$0xff] }
  0xd0   :  { %640 = vmatpush.msrb.mxu0 %v627_v50 }
  0xd1   :  { %v292_v59 = vpop.f32.mrf.mxu1 }
  0xd2   :  { %v293_v62 = vadd.f32 %v292_v59, %v273_v56  ;;  %v312_v63 = vpop.f32.mrf.mxu2  ;;  %641 = vmatpush.msrb.mxu0 %v626_v53  ;;  %v582_v56 = vsel %vm581_vm0, %v693_v34, %v580_v51 }
  0xd4   :  { %v313_v2 = vadd.f32 %v312_v63, %v293_v62  ;;  %642 = vmatpush.msrb.mxu0 %v625_v55  ;;  %v622_v62 = vld [vmem:[#allocation10 + $0x30] sm:$0xff] }
  0xd5   :  { %v332_v3 = vpop.f32.mrf.mxu3 }
  0xd6   :  { %v333_v6 = vadd.f32 %v332_v3, %v313_v2  ;;  %643 = vmatpush.msrb.mxu0 %v624_v58  ;;  %v620_v2 = vld [vmem:[#allocation10 + $0x20] sm:$0xff] }
  0xd8   :  { %v352_v9 = vpop.f32.mrf.mxu0  ;;  %644 = vmatpush.msrb.mxu0 %v623_v60 }
  0xd9   :  { %v353_v10 = vadd.f32 %v352_v9, %v333_v6  ;;  %v618_v6 = vld [vmem:[#allocation10 + $0x10] sm:$0xff]  ;;  %v616_v9 = vld [vmem:[#allocation10] sm:$0xff] }
  0xda   :  { %v372_v13 = vpop.f32.mrf.mxu1  ;;  %645 = vmatpush.msrb.mxu0 %v622_v62 }
  0xdb   :  { %v373_v14 = vadd.f32 %v372_v13, %v353_v10 }
  0xdc   :  { %v392_v17 = vpop.f32.mrf.mxu2  ;;  %646 = vmatpush.msrb.mxu0 %v621_v0 }
  0xdd   :  { %v393_v18 = vadd.f32 %v392_v17, %v373_v14 }
  0xde   :  { %v412_v19 = vpop.f32.mrf.mxu3  ;;  %647 = vmatpush.msrb.mxu0 %v620_v2 }
  0xdf   :  { %v413_v20 = vadd.f32 %v412_v19, %v393_v18 }
  0xe0   :  { %648 = vmatpush.msrb.mxu0 %v619_v4 }
  0xe1   :  { %v415_v21 = vmax.f32 %v413_v20, 0.0  ;;  %v689_v20 = vld [vmem:[%s971_s7] ss:$0 sm:$0xff]  ;;  %s664_s7 = sshll.u32 %s975_s11, 4  ;;  %s665_s7 = int_to_ptr.hbm [resolvable:$true] %s664_s7 }
  0xe2   :  { %649 = vmatpush.msrb.mxu0 %v618_v6 }
  0xe3   :  { %470 = vmatmul.f32.vlgmr.msra.gmra.mxu0 %v415_v21  ;;  %490 = vmatmul.f32.vlgmr.msra.gmra.mxu1 %v415_v21 }
  0xe4   :  { %650 = vmatpush.msrb.mxu0 %v617_v7 }
  0xe6   :  { %651 = vmatpush.msrb.mxu0 %v616_v9 }
 0x160   :  { %v471_v29 = vpop.f32.mrf.mxu0  ;;  %v491_v30 = vpop.f32.mrf.mxu1 }
 0x161   :  { %v472_v31 = vadd.f32 %v471_v29, %v450_v27  ;;  %v492_v32 = vadd.f32 %v491_v30, %v451_v28  ;;  %v691_v27 = vld [vmem:[%s974_s10] ss:$0 sm:$0xff] }
 0x163   :  { %546 = vmatmul.f32.vlgmr.msra.gmra.mxu2 %v472_v31  ;;  %566 = vmatmul.f32.vlgmr.msra.gmra.mxu3 %v492_v32 }
 0x1e6   :  { %v547_v37 = vpop.f32.mrf.mxu2  ;;  %v567_v40 = vpop.f32.mrf.mxu3 }
 0x1e7   :  { %v548_v38 = vadd.f32 %v688_v35, %v547_v37 }
 0x1e9   :  { %v568_v42 = vadd.f32 %v567_v40, %v548_v38 }
 0x1eb   :  { %v570_v44 = vrot.slane %v568_v42, 4 }
 0x1ed   :  { %v571_v47 = vadd.f32 %v570_v44, %v568_v42 }
 0x1ef   :  { %v572_v49 = vrot.slane %v571_v47, 2 }
 0x1f1   :  { %v573_v52 = vadd.f32 %v572_v49, %v571_v47 }
 0x1f3   :  { %v574_v54 = vrot.slane %v573_v52, 1 }
 0x1f5   :  { %v575_v57 = vadd.f32 %v574_v54, %v573_v52 }
 0x1f7   :  { %v583_v59 = vmul.f32 %v582_v56, %v575_v57 }
 0x1f9   :  { %v584_v61 = vsub.f32 %v568_v42, %v583_v59 }
 0x1fb   :  { %v585_v63 = vmul.f32 %v584_v61, %v584_v61 }
 0x1fd   :  { %v586_v1 = vrot.slane %v585_v63, 4 }
 0x1ff   :  { %v587_v3 = vadd.f32 %v586_v1, %v585_v63 }
 0x201   :  { %v588_v5 = vrot.slane %v587_v3, 2 }
 0x203   :  { %v589_v8 = vadd.f32 %v588_v5, %v587_v3 }
 0x205   :  { %v590_v10 = vrot.slane %v589_v8, 1 }
 0x207   :  { %v591_v11 = vadd.f32 %v590_v10, %v589_v8 }
 0x209   :  { %v592_v12 = vmul.f32 %v591_v11, %v582_v56 }
 0x20b   :  { %v593_v13 = vadd.f32 1e-05, %v592_v12 }
 0x20d   :  { %694 = vrsqrt.f32 %v593_v13  ;;  %vm600_vm2 = vweird.f32 %v593_v13 }
 0x213   :  { %v695_v14 = vpop.eup %694 }
 0x214   :  { %v595_v15 = vmul.f32 %v695_v14, %v593_v13  ;;  %vm601_vm1 = vweird.f32 %v695_v14 }
 0x215   :  { %vm602_vm3 = vmor %vm600_vm2, %vm601_vm1 }
 0x216   :  { %v596_v16 = vmul.f32 %v695_v14, %v595_v15 }
 0x218   :  { %v597_v17 = vmul.f32 0.5, %v596_v16 }
 0x21a   :  { %v598_v18 = vsub.f32 1.5, %v597_v17 }
 0x21c   :  { %v599_v19 = vmul.f32 %v695_v14, %v598_v18 }
 0x21e   :  { %v603_v21 = vsel %vm602_vm3, %v695_v14, %v599_v19 }
 0x21f   :  { %v604_v22 = vmul.f32 %v603_v21, %v584_v61 }
 0x221   :  { %v609_v24 = vmul.f32 %v689_v20, %v604_v22 }
 0x223   :  { %v614_v25 = vadd.f32 %v690_v23, %v609_v24 }
 0x225   :  { %v615_v26 = vmax.f32 %v614_v25, 0.0 }
 0x227   :  { %652 = vmatmul.f32.vlgmr.msrb.gmra.mxu0 %v615_v26 }
 0x2a4   :  { %v653_v28 = vpop.f32.mrf.mxu0 }
 0x2a5   :  { %v654_v29 = vadd.f32 %v691_v27, %v653_v28 }
 0x2a7   :  { %656 = vst [vmem:[#allocation11] sm:$0xff] %v654_v29 }
 0x2a8   :  { %667 = dma.vmem_to_hbm [thread:$0]  %s663_s5, 128, %s665_s7, [#allocation4]  }
 0x2a9   :  { %846 = dma.done.wait [#allocation4], 128  }
 0x2aa   :  { %847 = vsyncadd [#allocation4], 4294967168 }
 0x2ab   :  { %672 = vsyncpa [#allocation3], 1 }
 0x2ac   :  { %673 = vsyncpa [#allocation6], 1 }
 0x2ad   :  { %674 = vsyncpa [#allocation9], 1 }
 0x2ae   :  { %675 = vsyncpa [#allocation4], 1 }

</bundles_post_ra>
